<compile_context>
chip_gen: v6e
topology: v6e:2x2x1
jax: 0.10.0
libtpu: 0.0.40
codegen_flags: <defaults>
</compile_context>

<pallas_src>
import numpy as np
import jax
import jax.numpy as jnp
from jax.experimental import pallas as pl
from jax.experimental.pallas import tpu as pltpu

# ---- synthetic config (TextCNNArguments) ----
VOCAB = 50                   # config.vocab_size
EMB = 32                     # config.embedding_dim
FILTERS = (2, 3, 4)          # config.filters
NUM_FILTERS = (8, 8, 8)      # config.num_filters
NUM_LABELS = 4               # config.num_labels
B = 2                        # batch
L = 16                       # sequence length
FEATURE_DIM = sum(NUM_FILTERS)

FS_MAX = max(FILTERS)
N_PACK = 128                 # lane-dense packed feature / output width
V_PAD = 64                   # one-hot / folded-weight contraction dim (VOCAB padded)
BT = B                       # batch tile per grid step (== B at demo size -> grid=(1,))

assert VOCAB <= V_PAD and FEATURE_DIM <= N_PACK and NUM_LABELS <= N_PACK
assert B % BT == 0

# ---- constant-slab row layout (all section offsets are multiples of 8) ----
ROW_FCW = FS_MAX * V_PAD                      # 256: fc weight (128 x 128)
ROW_MASK = ROW_FCW + N_PACK                   # 384: per-filter time-validity mask (L rows)
ROW_BIAS = ROW_MASK + ((L + 7) // 8) * 8      # 400: conv bias (row 0 of an 8-row block)
ROW_FCB = ROW_BIAS + 8                        # 408: fc bias   (row 0 of an 8-row block)
SLAB_ROWS = ROW_FCB + 8                       # 416 rows x 128 lanes x f32 ~= 208 KiB


def textcnn_kernel(ohs_ref, slab_ref, out_ref):
    # Conv (all filter widths at once): sum over taps r of
    #   onehot_shifted_by_r @ (table @ W_r)   -- table already folded host-side.
    # All slab slices are static and 8-row aligned (free Ref views).
    acc = jnp.dot(ohs_ref[0], slab_ref[0:V_PAD, :],
                  preferred_element_type=jnp.float32)                    # (BT*L, 128)
    for r in range(1, FS_MAX):
        acc = acc + jnp.dot(ohs_ref[r], slab_ref[r * V_PAD:(r + 1) * V_PAD, :],
                            preferred_element_type=jnp.float32)

    # Bias + ReLU (fused epilogue, f32 on the VPU).
    conv = jnp.maximum(acc + slab_ref[ROW_BIAS:ROW_BIAS + 1, :], 0.0)    # (BT*L, 128)

    # Zero invalid time positions per filter (valid because post-ReLU >= 0),
    # then max-pool over time.
    conv = conv.reshape(BT, L, N_PACK) * slab_ref[ROW_MASK:ROW_MASK + L, :]
    pooled = jnp.max(conv, axis=1)                                       # (BT, 128)

    # Dropout: identity at inference time.  FC as a lane-dense 128x128 matmul.
    out = jnp.dot(pooled, slab_ref[ROW_FCW:ROW_FCW + N_PACK, :],
                  preferred_element_type=jnp.float32) \
          + slab_ref[ROW_FCB:ROW_FCB + 1, :]                             # (BT, 128)
    out_ref[...] = out.astype(out_ref.dtype)


def pack_params(emb_table, conv_ws, conv_bs, fc_w, fc_b):
    """Fold the embedding table into the conv weights and pack ALL constant
    parameters into one (SLAB_ROWS, 128) f32 slab. All padding is exact zeros."""
    table = np.asarray(emb_table, np.float32)                 # (VOCAB, EMB)
    slab = np.zeros((SLAB_ROWS, N_PACK), np.float32)

    col = 0
    for fs, nf, w, b in zip(FILTERS, NUM_FILTERS, conv_ws, conv_bs):
        w = np.asarray(w, np.float32)                         # (fs, EMB, nf)
        for r in range(fs):
            # folded tap weight: token id -> per-filter contribution of tap r
            slab[r * V_PAD:r * V_PAD + VOCAB, col:col + nf] = table @ w[r]
        slab[ROW_BIAS, col:col + nf] = np.asarray(b, np.float32).reshape(nf)
        # valid conv output positions for this filter width: t in [0, L - fs]
        slab[ROW_MASK:ROW_MASK + (L - fs + 1), col:col + nf] = 1.0
        col += nf

    slab[ROW_FCW:ROW_FCW + FEATURE_DIM, :NUM_LABELS] = np.asarray(fc_w, np.float32)
    slab[ROW_FCB, :NUM_LABELS] = np.asarray(fc_b, np.float32).reshape(NUM_LABELS)
    return jnp.asarray(slab)


def build_onehot_stack(tokens):
    """(FS_MAX, B*L, V_PAD) f32: tap-r slice is the one-hot of the tokens shifted
    left by r within each sequence; out-of-sequence taps get an all-zero row."""
    vocab_ids = jnp.arange(V_PAD, dtype=jnp.int32)
    ohs = []
    for r in range(FS_MAX):
        if r == 0:
            shifted = tokens
        else:
            shifted = jnp.concatenate(
                [tokens[:, r:], jnp.full((B, r), -1, jnp.int32)], axis=1)
        oh = (shifted.reshape(B * L, 1) == vocab_ids).astype(jnp.float32)
        ohs.append(oh)
    return jnp.stack(ohs, axis=0)


def textcnn_forward(tokens, slab):
    oh_stack = build_onehot_stack(tokens)                     # (FS_MAX, B*L, V_PAD)

    out_padded = pl.pallas_call(
        textcnn_kernel,
        out_shape=jax.ShapeDtypeStruct((B, N_PACK), jnp.float32),
        grid=(B // BT,),
        in_specs=[
            # batch-tile of pre-shifted one-hots
            pl.BlockSpec((FS_MAX, BT * L, V_PAD), lambda i: (0, i, 0)),
            # constant parameter slab: same block every step -> stays resident
            pl.BlockSpec((SLAB_ROWS, N_PACK), lambda i: (0, 0)),
        ],
        out_specs=pl.BlockSpec((BT, N_PACK), lambda i: (i, 0)),
        compiler_params=pltpu.CompilerParams(
            dimension_semantics=("parallel",)),   # uses both TCs on v7x at scale
    )(oh_stack, slab)
    return out_padded[:, :NUM_LABELS]


def init_params(key):
    keys = jax.random.split(key, 3 + 2 * len(FILTERS))
    k_emb, k_fcw, k_fcb = keys[0], keys[1], keys[2]

    emb_table = jax.random.normal(k_emb, (VOCAB, EMB), jnp.float32)  # nn.Embedding N(0,1)

    conv_ws, conv_bs = [], []
    for i, (fs, nf) in enumerate(zip(FILTERS, NUM_FILTERS)):
        kw, kb = keys[3 + 2 * i], keys[4 + 2 * i]
        bound = 1.0 / jnp.sqrt(jnp.float32(1 * fs * EMB))  # fan_in = in_ch * kh * kw
        # PyTorch Conv2d weight (nf, 1, fs, E) -> kernel layout (fs, E, nf)
        w_torch = jax.random.uniform(kw, (nf, 1, fs, EMB), jnp.float32, -bound, bound)
        w = jnp.transpose(w_torch[:, 0, :, :], (1, 2, 0))              # (fs, E, nf)
        b = jax.random.uniform(kb, (1, nf), jnp.float32, -bound, bound)
        conv_ws.append(w)
        conv_bs.append(b)

    fbound = 1.0 / jnp.sqrt(jnp.float32(FEATURE_DIM))
    # PyTorch Linear weight (num_labels, feature_dim) -> (feature_dim, num_labels)
    fc_w = jax.random.uniform(k_fcw, (NUM_LABELS, FEATURE_DIM), jnp.float32,
                              -fbound, fbound).T
    fc_b = jax.random.uniform(k_fcb, (1, NUM_LABELS), jnp.float32, -fbound, fbound)
    return emb_table, conv_ws, conv_bs, fc_w, fc_b


def reference_forward(tokens, emb_table, conv_ws, conv_bs, fc_w, fc_b):
    emb = jnp.take(emb_table, tokens, axis=0)                          # (B, L, E)
    pooled = []
    for fs, w, b in zip(FILTERS, conv_ws, conv_bs):
        l_out = L - fs + 1
        acc = jnp.zeros((B, l_out, w.shape[-1]), jnp.float32)
        for r in range(fs):
            acc = acc + jnp.einsum('ble,ef->blf', emb[:, r:r + l_out, :], w[r])
        conv = jnp.maximum(acc + b, 0.0)
        pooled.append(jnp.max(conv, axis=1))
    cat = jnp.concatenate(pooled, axis=-1)
    return cat @ fc_w + fc_b


if __name__ == "__main__":
    key = jax.random.PRNGKey(0)
    k_tok, k_params = jax.random.split(key)

    tokens = jax.random.randint(k_tok, (B, L), 0, VOCAB, dtype=jnp.int32)
    emb_table, conv_ws, conv_bs, fc_w, fc_b = init_params(k_params)
    slab = pack_params(emb_table, conv_ws, conv_bs, fc_w, fc_b)

    out = textcnn_forward(tokens, slab)
    out = jax.block_until_ready(out)

    ref = reference_forward(tokens, emb_table, conv_ws, conv_bs, fc_w, fc_b)
    assert out.shape == (B, NUM_LABELS)
    assert jnp.allclose(out, ref, atol=5e-4, rtol=5e-4), (out, ref)

    print("KERNEL_OK")
</pallas_src>

<mosaic_0001>
module attributes {stable_mosaic.version = 11 : i64} {
  func.func @textcnn_kernel(%arg0: i32, %arg1: memref<4x32x64xf32, #tpu.memory_space<vmem>>, %arg2: memref<416x128xf32, #tpu.memory_space<vmem>>, %arg3: memref<2x128xf32, #tpu.memory_space<vmem>>) attributes {dimension_semantics = [#tpu.dimension_semantics<parallel>], iteration_bounds = array<i64: 1>, scalar_prefetch = 0 : i64, scratch_operands = 0 : i64, tpu.core_type = #tpu.core_type<tc>, window_params = [{transform_indices = @transform_0, window_bounds = array<i64: 4, 32, 64>}, {pipeline_mode = #tpu.pipeline_mode<synchronous>, transform_indices = @transform_1, window_bounds = array<i64: 416, 128>}, {transform_indices = @transform_2, window_bounds = array<i64: 2, 128>}]} {
    %c0 = arith.constant 0 : index
    %c0_0 = arith.constant 0 : index
    %c0_1 = arith.constant 0 : index
    %0 = vector.load %arg1[%c0, %c0_0, %c0_1] : memref<4x32x64xf32, #tpu.memory_space<vmem>>, vector<1x32x64xf32>
    %1 = vector.shape_cast %0 : vector<1x32x64xf32> to vector<32x64xf32>
    %c0_2 = arith.constant 0 : index
    %c0_3 = arith.constant 0 : index
    %2 = vector.load %arg2[%c0_2, %c0_3] : memref<416x128xf32, #tpu.memory_space<vmem>>, vector<64x128xf32>
    %cst = arith.constant dense<0.000000e+00> : vector<32x128xf32>
    %3 = tpu.matmul %1, %2, %cst {dimension_numbers = #tpu.dot_dimension_numbers<[1], [0], [0], [1], [0, 0, 1, 1], [], []>} : vector<32x64xf32>, vector<64x128xf32>, vector<32x128xf32> -> vector<32x128xf32>
    %c1 = arith.constant 1 : index
    %c0_4 = arith.constant 0 : index
    %c0_5 = arith.constant 0 : index
    %4 = vector.load %arg1[%c1, %c0_4, %c0_5] : memref<4x32x64xf32, #tpu.memory_space<vmem>>, vector<1x32x64xf32>
    %5 = vector.shape_cast %4 : vector<1x32x64xf32> to vector<32x64xf32>
    %c64 = arith.constant 64 : index
    %c0_6 = arith.constant 0 : index
    %6 = vector.load %arg2[%c64, %c0_6] : memref<416x128xf32, #tpu.memory_space<vmem>>, vector<64x128xf32>
    %cst_7 = arith.constant dense<0.000000e+00> : vector<32x128xf32>
    %7 = tpu.matmul %5, %6, %cst_7 {dimension_numbers = #tpu.dot_dimension_numbers<[1], [0], [0], [1], [0, 0, 1, 1], [], []>} : vector<32x64xf32>, vector<64x128xf32>, vector<32x128xf32> -> vector<32x128xf32>
    %8 = arith.addf %3, %7 : vector<32x128xf32>
    %c2 = arith.constant 2 : index
    %c0_8 = arith.constant 0 : index
    %c0_9 = arith.constant 0 : index
    %9 = vector.load %arg1[%c2, %c0_8, %c0_9] : memref<4x32x64xf32, #tpu.memory_space<vmem>>, vector<1x32x64xf32>
    %10 = vector.shape_cast %9 : vector<1x32x64xf32> to vector<32x64xf32>
    %c128 = arith.constant 128 : index
    %c0_10 = arith.constant 0 : index
    %11 = vector.load %arg2[%c128, %c0_10] : memref<416x128xf32, #tpu.memory_space<vmem>>, vector<64x128xf32>
    %cst_11 = arith.constant dense<0.000000e+00> : vector<32x128xf32>
    %12 = tpu.matmul %10, %11, %cst_11 {dimension_numbers = #tpu.dot_dimension_numbers<[1], [0], [0], [1], [0, 0, 1, 1], [], []>} : vector<32x64xf32>, vector<64x128xf32>, vector<32x128xf32> -> vector<32x128xf32>
    %13 = arith.addf %8, %12 : vector<32x128xf32>
    %c3 = arith.constant 3 : index
    %c0_12 = arith.constant 0 : index
    %c0_13 = arith.constant 0 : index
    %14 = vector.load %arg1[%c3, %c0_12, %c0_13] : memref<4x32x64xf32, #tpu.memory_space<vmem>>, vector<1x32x64xf32>
    %15 = vector.shape_cast %14 : vector<1x32x64xf32> to vector<32x64xf32>
    %c192 = arith.constant 192 : index
    %c0_14 = arith.constant 0 : index
    %16 = vector.load %arg2[%c192, %c0_14] : memref<416x128xf32, #tpu.memory_space<vmem>>, vector<64x128xf32>
    %cst_15 = arith.constant dense<0.000000e+00> : vector<32x128xf32>
    %17 = tpu.matmul %15, %16, %cst_15 {dimension_numbers = #tpu.dot_dimension_numbers<[1], [0], [0], [1], [0, 0, 1, 1], [], []>} : vector<32x64xf32>, vector<64x128xf32>, vector<32x128xf32> -> vector<32x128xf32>
    %18 = arith.addf %13, %17 : vector<32x128xf32>
    %c400 = arith.constant 400 : index
    %c0_16 = arith.constant 0 : index
    %19 = vector.load %arg2[%c400, %c0_16] : memref<416x128xf32, #tpu.memory_space<vmem>>, vector<1x128xf32>
    %20 = vector.broadcast %19 : vector<1x128xf32> to vector<32x128xf32>
    %21 = arith.addf %18, %20 : vector<32x128xf32>
    %cst_17 = arith.constant 0.000000e+00 : f32
    %22 = vector.broadcast %cst_17 : f32 to vector<32x128xf32>
    %23 = arith.maximumf %21, %22 : vector<32x128xf32>
    %24 = vector.shape_cast %23 : vector<32x128xf32> to vector<2x16x128xf32>
    %c384 = arith.constant 384 : index
    %c0_18 = arith.constant 0 : index
    %25 = vector.load %arg2[%c384, %c0_18] : memref<416x128xf32, #tpu.memory_space<vmem>>, vector<16x128xf32>
    %26 = vector.shape_cast %25 : vector<16x128xf32> to vector<1x16x128xf32>
    %27 = vector.broadcast %26 : vector<1x16x128xf32> to vector<2x16x128xf32>
    %28 = arith.mulf %24, %27 : vector<2x16x128xf32>
    %cst_19 = arith.constant dense<0xFF800000> : vector<2x128xf32>
    %29 = vector.multi_reduction <maximumf>, %28, %cst_19 [1] : vector<2x16x128xf32> to vector<2x128xf32>
    %c256 = arith.constant 256 : index
    %c0_20 = arith.constant 0 : index
    %30 = vector.load %arg2[%c256, %c0_20] : memref<416x128xf32, #tpu.memory_space<vmem>>, vector<128x128xf32>
    %cst_21 = arith.constant dense<0.000000e+00> : vector<2x128xf32>
    %31 = tpu.matmul %29, %30, %cst_21 {dimension_numbers = #tpu.dot_dimension_numbers<[1], [0], [0], [1], [0, 0, 1, 1], [], []>} : vector<2x128xf32>, vector<128x128xf32>, vector<2x128xf32> -> vector<2x128xf32>
    %c408 = arith.constant 408 : index
    %c0_22 = arith.constant 0 : index
    %32 = vector.load %arg2[%c408, %c0_22] : memref<416x128xf32, #tpu.memory_space<vmem>>, vector<1x128xf32>
    %33 = vector.broadcast %32 : vector<1x128xf32> to vector<2x128xf32>
    %34 = arith.addf %31, %33 : vector<2x128xf32>
    %c0_23 = arith.constant 0 : index
    %c0_24 = arith.constant 0 : index
    %35 = vector.load %arg3[%c0_23, %c0_24] : memref<2x128xf32, #tpu.memory_space<vmem>>, vector<2x128xf32>
    tpu.vector_store %arg3[%c0_23, %c0_24], %34 {strides = array<i32>} : memref<2x128xf32, #tpu.memory_space<vmem>>, vector<2x128xf32>,
    return
  }
  func.func @transform_0(%arg0: i32) -> (i32, i32, i32) {
    %c0_i32 = arith.constant 0 : i32
    %c0_i32_0 = arith.constant 0 : i32
    %c0_i32_1 = arith.constant 0 : i32
    return %c0_i32, %arg0, %c0_i32_0 : i32, i32, i32
  }
  func.func @transform_1(%arg0: i32) -> (i32, i32) {
    %c0_i32 = arith.constant 0 : i32
    %c0_i32_0 = arith.constant 0 : i32
    %c0_i32_1 = arith.constant 0 : i32
    return %c0_i32, %c0_i32_0 : i32, i32
  }
  func.func @transform_2(%arg0: i32) -> (i32, i32) {
    %c0_i32 = arith.constant 0 : i32
    %c0_i32_0 = arith.constant 0 : i32
    return %arg0, %c0_i32 : i32, i32
  }
}

</mosaic_0001>

<bundles_post_ra>
// kernel: tpu_custom_call.1
= control target key start
LH: loop header
LB: loop body
LE: loop exit
PB: predicated region body
PF: predicated region fallthrough
CT: control target
= control target key end

     0   :  { %7 = vsyncpa [#allocation3], 0  ;;  %s960_s0 = inlined_call_operand.hbm [shape: f32[4,32,64], index: 0, kind: input, shape index: {}]   ;;  %s961_s1 = inlined_call_operand.hbm [shape: f32[416,128], index: 1, kind: input, shape index: {}]   ;;  %s962_s2 = inlined_call_operand.hbm [shape: f32[2,128], index: 2, kind: output, shape index: {}]  }
   0x1   :  { %8 = vsyncpa [#allocation6], 0 }
   0x2   :  { %9 = vsyncpa [#allocation4], 0  ;;  %s913_s9 = smov [#allocation2]  }
   0x3   :  { %s15_s10 = sshll.u32 %s913_s9, 4  ;;  %s16_s10 = int_to_ptr.vmem [resolvable:$true] %s15_s10 }
   0x4   :  { %s855_s11 = scalar_lea.vmem %s16_s10, 2048  ;;  %p860_p1 = scmp.lt.s32.totalorder %s16_s10, %s16_s10 }
   0x5   :  { %p856_p0 = scmp.ne.s32.totalorder %s16_s10, %s855_s11  ;;  %p861_p2 = scmp.lt.s32.totalorder %s855_s11, %s855_s11 }
   0x7   :  { %p862_p3 = por %p861_p2, %p860_p1 }
   0x9   :  { %p863_p4 = pnand %p862_p3, %p856_p0 }
   0xb   :  { %866 = shalt.err (!%p863_p4)
}
   0xc   :  { %s914_s12 = smov 128   ;;  %s915_s13 = smov 8  }
   0xd   :  { %21 = dma.hbm_to_vmem [thread:$0]  %s960_s0, 2048, %s16_s10, [#allocation3], %s914_s12, %s914_s12, %s915_s13  }
   0xe   :  { %s916_s16 = smov [#allocation5]  }
   0xf   :  { %s27_s17 = sshll.u32 %s916_s16, 4  ;;  %s28_s17 = int_to_ptr.vmem [resolvable:$true] %s27_s17 }
  0x10   :  { %s875_s18 = scalar_lea.vmem %s28_s17, 6656  ;;  %p880_p6 = scmp.lt.s32.totalorder %s28_s17, %s28_s17 }
  0x11   :  { %p876_p5 = scmp.ne.s32.totalorder %s28_s17, %s875_s18  ;;  %p881_p7 = scmp.lt.s32.totalorder %s875_s18, %s875_s18 }
  0x13   :  { %p882_p8 = por %p881_p7, %p880_p6 }
  0x15   :  { %p883_p9 = pnand %p882_p8, %p876_p5 }
  0x17   :  { %886 = shalt.err (!%p883_p9)
}
  0x18   :  { %33 = dma.hbm_to_vmem [thread:$0]  %s961_s1, 6656, %s28_s17, [#allocation6], %s914_s12, %s914_s12, %s915_s13  }
  0x19   :  { %907 = dma.done.wait [#allocation3], 2048  }
  0x1a   :  { %908 = vsyncadd [#allocation3], 4294965248 }
  0x1b   :  { %909 = dma.done.wait [#allocation6], 6656  }
  0x1c   :  { %910 = vsyncadd [#allocation6], 4294960640  ;;  %v64_v0 = vld [vmem:[#allocation5 + $0x78] sm:$0xff]  ;;  %v63_v1 = vld [vmem:[#allocation5 + $0x70] sm:$0xff]  ;;  %vm65_vm0 = vcmask 523264   ;;  %v917_v49 = vmov 0.0  }
  0x1d   :  { %717 = vmatprep.subr.mxu1 %v64_v0  ;;  %v62_v2 = vld [vmem:[#allocation5 + $0x68] sm:$0xff]  ;;  %v53_v3 = vld [vmem:[#allocation2 + $0x20] sm:$0xff]  ;;  %v272_v5 = vld [vmem:[#allocation5 + $0xb8] sm:$0xff]  ;;  %vm918_vm1 = vmmov 0   ;;  %vm544_vm2 = vcmask 1041409   ;;  %s919_s0 = smov [#allocation7]  }
  0x1e   :  { %718 = vmatpush3.msra.mxu1 %v64_v0  ;;  %733 = vmatprep.mubr.msk.f32.mxu1 %vm65_vm0, %v53_v3  ;;  %v61_v4 = vld [vmem:[#allocation5 + $0x60] sm:$0xff]  ;;  %v271_v6 = vld [vmem:[#allocation5 + $0xb0] sm:$0xff]  ;;  %v60_v7 = vld [vmem:[#allocation5 + $0x58] sm:$0xff]  ;;  %s624_s1 = sshll.u32 %s919_s0, 4  ;;  %s625_s1 = int_to_ptr.vmem [resolvable:$true] %s624_s1 }
  0x1f   :  { %719 = vmatprep.subr.mxu1 %v63_v1  ;;  %761 = vmatprep.subr.mxu0 %v272_v5  ;;  %v270_v8 = vld [vmem:[#allocation5 + $0xa8] sm:$0xff]  ;;  %v59_v9 = vld [vmem:[#allocation5 + $0x50] sm:$0xff]  ;;  %v269_v10 = vld [vmem:[#allocation5 + $0xa0] sm:$0xff]  ;;  %s887_s21 = scalar_lea.vmem %s625_s1, 32  ;;  %p892_p11 = scmp.lt.s32.totalorder %s625_s1, %s625_s1 }
  0x20   :  { %720 = vmatpush3.msra.mxu1 %v63_v1  ;;  %762 = vmatpush3.msra.mxu0 %v272_v5  ;;  %v58_v11 = vld [vmem:[#allocation5 + $0x48] sm:$0xff]  ;;  %v268_v12 = vld [vmem:[#allocation5 + $0x98] sm:$0xff]  ;;  %v57_v13 = vld [vmem:[#allocation5 + $0x40] sm:$0xff]  ;;  %p888_p10 = scmp.ne.s32.totalorder %s625_s1, %s887_s21  ;;  %p893_p12 = scmp.lt.s32.totalorder %s887_s21, %s887_s21 }
  0x21   :  { %721 = vmatprep.subr.mxu1 %v62_v2  ;;  %763 = vmatprep.subr.mxu0 %v271_v6  ;;  %v267_v14 = vld [vmem:[#allocation5 + $0x90] sm:$0xff]  ;;  %v54_v15 = vld [vmem:[#allocation2 + $0x28] sm:$0xff]  ;;  %v51_v16 = vld [vmem:[#allocation5 + $0x38] sm:$0xff] }
  0x22   :  { %722 = vmatpush3.msra.mxu1 %v62_v2  ;;  %764 = vmatpush3.msra.mxu0 %v271_v6  ;;  %v55_v17 = vld [vmem:[#allocation2 + $0x30] sm:$0xff]  ;;  %v266_v19 = vld [vmem:[#allocation5 + $0x88] sm:$0xff]  ;;  %v56_v21 = vld [vmem:[#allocation2 + $0x38] sm:$0xff]  ;;  %p894_p13 = por %p893_p12, %p892_p11 }
  0x23   :  { %723 = vmatprep.subr.mxu1 %v61_v4  ;;  %765 = vmatprep.subr.mxu0 %v270_v8  ;;  %v50_v18 = vld [vmem:[#allocation5 + $0x30] sm:$0xff]  ;;  %v49_v20 = vld [vmem:[#allocation5 + $0x28] sm:$0xff]  ;;  %v40_v22 = vld [vmem:[#allocation2] sm:$0xff] }
  0x24   :  { %724 = vmatpush3.msra.mxu1 %v61_v4  ;;  %766 = vmatpush3.msra.mxu0 %v270_v8  ;;  %v48_v23 = vld [vmem:[#allocation5 + $0x20] sm:$0xff]  ;;  %v47_v25 = vld [vmem:[#allocation5 + $0x18] sm:$0xff]  ;;  %v262_v27 = vld [vmem:[#allocation2 + $0x48] sm:$0xff]  ;;  %p895_p0 = pnand %p894_p13, %p888_p10 }
  0x25   :  { %725 = vmatprep.subr.mxu1 %v60_v7  ;;  %767 = vmatprep.subr.mxu0 %v269_v10  ;;  %v265_v24 = vld [vmem:[#allocation5 + $0x80] sm:$0xff]  ;;  %v46_v28 = vld [vmem:[#allocation5 + $0x10] sm:$0xff]  ;;  %v45_v30 = vld [vmem:[#allocation5 + $0x8] sm:$0xff] }
  0x26   :  { %726 = vmatpush3.msra.mxu1 %v60_v7  ;;  %768 = vmatpush3.msra.mxu0 %v269_v10  ;;  %v261_v26 = vld [vmem:[#allocation2 + $0x40] sm:$0xff]  ;;  %v263_v29 = vld [vmem:[#allocation2 + $0x50] sm:$0xff]  ;;  %v264_v31 = vld [vmem:[#allocation2 + $0x58] sm:$0xff] }
  0x27   :  { %727 = vmatprep.subr.mxu1 %v59_v9  ;;  %769 = vmatprep.subr.mxu0 %v268_v12  ;;  %v44_v32 = vld [vmem:[#allocation5] sm:$0xff]  ;;  %v41_v33 = vld [vmem:[#allocation2 + $0x8] sm:$0xff]  ;;  %v386_v34 = vld [vmem:[#allocation5 + $0xf8] sm:$0xff] }
  0x28   :  { %728 = vmatpush3.msra.mxu1 %v59_v9  ;;  %770 = vmatpush3.msra.mxu0 %v268_v12  ;;  %v42_v35 = vld [vmem:[#allocation2 + $0x10] sm:$0xff]  ;;  %v43_v37 = vld [vmem:[#allocation2 + $0x18] sm:$0xff]  ;;  %v384_v38 = vld [vmem:[#allocation5 + $0xe8] sm:$0xff] }
  0x29   :  { %729 = vmatprep.subr.mxu1 %v58_v11  ;;  %771 = vmatprep.subr.mxu0 %v267_v14  ;;  %v385_v36 = vld [vmem:[#allocation5 + $0xf0] sm:$0xff]  ;;  %v375_v39 = vld [vmem:[#allocation2 + $0x60] sm:$0xff]  ;;  %v382_v41 = vld [vmem:[#allocation5 + $0xd8] sm:$0xff] }
  0x2a   :  { %730 = vmatpush3.msra.mxu1 %v58_v11  ;;  %772 = vmatpush3.msra.mxu0 %v267_v14  ;;  %v383_v40 = vld [vmem:[#allocation5 + $0xe0] sm:$0xff]  ;;  %v381_v42 = vld [vmem:[#allocation5 + $0xd0] sm:$0xff]  ;;  %v380_v43 = vld [vmem:[#allocation5 + $0xc8] sm:$0xff] }
  0x2b   :  { %731 = vmatprep.subr.mxu1 %v57_v13  ;;  %773 = vmatprep.subr.mxu0 %v266_v19  ;;  %v379_v44 = vld [vmem:[#allocation5 + $0xc0] sm:$0xff]  ;;  %v376_v45 = vld [vmem:[#allocation2 + $0x68] sm:$0xff]  ;;  %v377_v46 = vld [vmem:[#allocation2 + $0x70] sm:$0xff] }
  0x2c   :  { %732 = vmatpush3.msra.mxu1 %v57_v13  ;;  %774 = vmatpush3.msra.mxu0 %v266_v19  ;;  %v378_v47 = vld [vmem:[#allocation2 + $0x78] sm:$0xff]  ;;  %v535_v50 = vld [vmem:[#allocation5 + $0x170] sm:$0xff]  ;;  %v534_v51 = vld [vmem:[#allocation5 + $0x168] sm:$0xff] }
  0x2d   :  { %734 = vmatmul.mubr.msk.f32.vlgmr.msra.gmra.mxu1 %vm65_vm0, %v54_v15  ;;  %739 = vmatprep.subr.mxu1 %v51_v16  ;;  %v536_v48 = vld [vmem:[#allocation5 + $0x178] sm:$0xff]  ;;  %v533_v52 = vld [vmem:[#allocation5 + $0x160] sm:$0xff]  ;;  %v531_v54 = vld [vmem:[#allocation5 + $0x150] sm:$0xff] }
  0x2e   :  { %740 = vmatpush3.msra.mxu1 %v51_v16  ;;  %736 = vmatprep.mubr.msk.f32.mxu1 %vm65_vm0, %v55_v17  ;;  %v532_v53 = vld [vmem:[#allocation5 + $0x158] sm:$0xff]  ;;  %v530_v55 = vld [vmem:[#allocation5 + $0x148] sm:$0xff]  ;;  %v529_v56 = vld [vmem:[#allocation5 + $0x140] sm:$0xff] }
  0x2f   :  { %741 = vmatprep.subr.mxu1 %v50_v18  ;;  %775 = vmatprep.subr.mxu0 %v265_v24  ;;  %v528_v57 = vld [vmem:[#allocation5 + $0x138] sm:$0xff]  ;;  %v527_v58 = vld [vmem:[#allocation5 + $0x130] sm:$0xff]  ;;  %v526_v59 = vld [vmem:[#allocation5 + $0x128] sm:$0xff] }
  0x30   :  { %742 = vmatpush3.msra.mxu1 %v50_v18  ;;  %776 = vmatpush3.msra.mxu0 %v265_v24  ;;  %v525_v60 = vld [vmem:[#allocation5 + $0x120] sm:$0xff]  ;;  %v524_v61 = vld [vmem:[#allocation5 + $0x118] sm:$0xff]  ;;  %v523_v62 = vld [vmem:[#allocation5 + $0x110] sm:$0xff] }
  0x31   :  { %743 = vmatprep.subr.mxu1 %v49_v20  ;;  %737 = vmatmul.mubr.msk.f32.gmra.mxu1 %vm65_vm0, %v56_v21  ;;  %v522_v63 = vld [vmem:[#allocation5 + $0x108] sm:$0xff]  ;;  %v521_v0 = vld [vmem:[#allocation5 + $0x100] sm:$0xff]  ;;  %v650_v17 = vld [vmem:[#allocation5 + $0x190] ss:$0 sm:$0xff] }
  0x32   :  { %744 = vmatpush3.msra.mxu1 %v49_v20  ;;  %755 = vmatprep.mubr.msk.f32.mxu1 %vm65_vm0, %v40_v22 }
  0x33   :  { %745 = vmatprep.subr.mxu1 %v48_v23  ;;  %777 = vmatprep.mubr.msk.f32.mxu0 %vm65_vm0, %v261_v26 }
  0x34   :  { %746 = vmatpush3.msra.mxu1 %v48_v23  ;;  %778 = vmatmul.mubr.msk.f32.vlgmr.msra.gmra.mxu0 %vm65_vm0, %v262_v27 }
  0x35   :  { %747 = vmatprep.subr.mxu1 %v47_v25  ;;  %780 = vmatprep.mubr.msk.f32.mxu0 %vm65_vm0, %v263_v29 }
  0x36   :  { %748 = vmatpush3.msra.mxu1 %v47_v25  ;;  %805 = vmatprep.subr.mxu0 %v917_v49 }
  0x37   :  { %749 = vmatprep.subr.mxu1 %v46_v28  ;;  %806 = vmatpush3.msra.mxu0 %v536_v48 }
  0x38   :  { %750 = vmatpush3.msra.mxu1 %v46_v28  ;;  %781 = vmatmul.mubr.msk.f32.gmra.mxu0 %vm65_vm0, %v264_v31  ;;  %v502_v31 = vld [vmem:[#allocation5 + $0x188] sm:$0xff] }
  0x39   :  { %751 = vmatprep.subr.mxu1 %v45_v30  ;;  %807 = vmatprep.subr.mxu0 %v917_v49 }
  0x3a   :  { %752 = vmatpush3.msra.mxu1 %v45_v30  ;;  %808 = vmatpush3.msra.mxu0 %v535_v50 }
  0x3b   :  { %753 = vmatprep.subr.mxu1 %v44_v32  ;;  %809 = vmatprep.subr.mxu0 %v917_v49 }
  0x3c   :  { %754 = vmatpush3.msra.mxu1 %v44_v32  ;;  %810 = vmatpush3.msra.mxu0 %v534_v51  ;;  %v501_v32 = vld [vmem:[#allocation5 + $0x180] sm:$0xff] }
  0x3d   :  { %756 = vmatmul.mubr.msk.f32.vlgmr.msra.gmra.mxu1 %vm65_vm0, %v41_v33  ;;  %783 = vmatprep.subr.mxu1 %v386_v34 }
  0x3e   :  { %784 = vmatpush3.msra.mxu1 %v386_v34  ;;  %758 = vmatprep.mubr.msk.f32.mxu1 %vm65_vm0, %v42_v35 }
  0x3f   :  { %785 = vmatprep.subr.mxu1 %v385_v36  ;;  %811 = vmatprep.subr.mxu0 %v917_v49 }
  0x40   :  { %786 = vmatpush3.msra.mxu1 %v385_v36  ;;  %812 = vmatpush3.msra.mxu0 %v533_v52 }
  0x41   :  { %759 = vmatmul.mubr.msk.f32.gmra.mxu1 %vm65_vm0, %v43_v37  ;;  %787 = vmatprep.subr.mxu1 %v384_v38 }
  0x42   :  { %788 = vmatpush3.msra.mxu1 %v384_v38  ;;  %799 = vmatprep.mubr.msk.f32.mxu1 %vm65_vm0, %v375_v39 }
  0x43   :  { %789 = vmatprep.subr.mxu1 %v383_v40  ;;  %813 = vmatprep.subr.mxu0 %v917_v49 }
  0x44   :  { %790 = vmatpush3.msra.mxu1 %v383_v40  ;;  %814 = vmatpush3.msra.mxu0 %v532_v53 }
  0x45   :  { %791 = vmatprep.subr.mxu1 %v382_v41  ;;  %815 = vmatprep.subr.mxu0 %v917_v49 }
  0x46   :  { %792 = vmatpush3.msra.mxu1 %v382_v41  ;;  %816 = vmatpush3.msra.mxu0 %v531_v54 }
  0x47   :  { %793 = vmatprep.subr.mxu1 %v381_v42  ;;  %817 = vmatprep.subr.mxu0 %v917_v49 }
  0x48   :  { %794 = vmatpush3.msra.mxu1 %v381_v42  ;;  %818 = vmatpush3.msra.mxu0 %v530_v55 }
  0x49   :  { %795 = vmatprep.subr.mxu1 %v380_v43  ;;  %819 = vmatprep.subr.mxu0 %v917_v49 }
  0x4a   :  { %796 = vmatpush3.msra.mxu1 %v380_v43  ;;  %820 = vmatpush3.msra.mxu0 %v529_v56 }
  0x4b   :  { %797 = vmatprep.subr.mxu1 %v379_v44  ;;  %821 = vmatprep.subr.mxu0 %v917_v49 }
  0x4c   :  { %798 = vmatpush3.msra.mxu1 %v379_v44  ;;  %822 = vmatpush3.msra.mxu0 %v528_v57 }
  0x4d   :  { %800 = vmatmul.mubr.msk.f32.vlgmr.msra.gmra.mxu1 %vm65_vm0, %v376_v45  ;;  %823 = vmatprep.subr.mxu0 %v917_v49 }
  0x4e   :  { %802 = vmatprep.mubr.msk.f32.mxu1 %vm65_vm0, %v377_v46  ;;  %824 = vmatpush3.msra.mxu0 %v527_v58 }
  0x4f   :  { %825 = vmatprep.subr.mxu0 %v917_v49  ;;  %837 = vmatprep.mubr.msk.f32.mxu0 %vm918_vm1, %v917_v49 }
  0x50   :  { %826 = vmatpush3.msra.mxu0 %v526_v59  ;;  %v651_v59 = vld [vmem:[#allocation5 + $0x198] ss:$0 sm:$0xff] }
  0x51   :  { %803 = vmatmul.mubr.msk.f32.gmra.mxu1 %vm65_vm0, %v378_v47  ;;  %827 = vmatprep.subr.mxu0 %v917_v49 }
  0x52   :  { %828 = vmatpush3.msra.mxu0 %v525_v60 }
  0x53   :  { %829 = vmatprep.subr.mxu0 %v917_v49 }
  0x54   :  { %830 = vmatpush3.msra.mxu0 %v524_v61 }
  0x55   :  { %831 = vmatprep.subr.mxu0 %v917_v49 }
  0x56   :  { %832 = vmatpush3.msra.mxu0 %v523_v62 }
  0x57   :  { %833 = vmatprep.subr.mxu0 %v917_v49 }
  0x58   :  { %834 = vmatpush3.msra.mxu0 %v522_v63 }
  0x59   :  { %835 = vmatprep.subr.mxu0 %v917_v49 }
  0x5a   :  { %836 = vmatpush3.msra.mxu0 %v521_v0 }
  0xed   :  { %v735_v1 = vpop.f32.mrf.mxu1 }
  0xef   :  { %v144_v2 = vpop.f32.mrf.mxu1 }
  0xf1   :  { %v738_v3 = vpop.f32.mrf.mxu1 }
  0xf3   :  { %v154_v4 = vpop.f32.mrf.mxu1 }
  0xf4   :  { %v779_v7 = vpop.f32.mrf.mxu0 }
  0xf6   :  { %v351_v9 = vpop.f32.mrf.mxu0 }
  0xf8   :  { %v782_v13 = vpop.f32.mrf.mxu0 }
  0xfa   :  { %v361_v21 = vpop.f32.mrf.mxu0 }
  0xfd   :  { %v757_v5 = vpop.f32.mrf.mxu1 }
  0xfe   :  { %v247_v10 = vadd.f32 %v757_v5, %v735_v1 }
  0xff   :  { %v241_v6 = vpop.f32.mrf.mxu1 }
 0x100   :  { %v242_v11 = vadd.f32 %v241_v6, %v144_v2  ;;  %v371_v14 = vadd.f32 %v779_v7, %v247_v10 }
 0x101   :  { %v760_v8 = vpop.f32.mrf.mxu1 }
 0x102   :  { %v257_v15 = vadd.f32 %v760_v8, %v738_v3  ;;  %v370_v18 = vadd.f32 %v351_v9, %v242_v11 }
 0x103   :  { %v251_v12 = vpop.f32.mrf.mxu1 }
 0x104   :  { %v252_v19 = vadd.f32 %v251_v12, %v154_v4  ;;  %v373_v23 = vadd.f32 %v782_v13, %v257_v15 }
 0x106   :  { %v372_v27 = vadd.f32 %v361_v21, %v252_v19 }
 0x10d   :  { %v801_v16 = vpop.f32.mrf.mxu1 }
 0x10e   :  { %v485_v20 = vadd.f32 %v801_v16, %v371_v14 }
 0x10f   :  { %v465_v22 = vpop.f32.mrf.mxu1 }
 0x110   :  { %v494_v24 = vadd.f32 %v650_v17, %v485_v20  ;;  %v484_v25 = vadd.f32 %v465_v22, %v370_v18 }
 0x111   :  { %v804_v26 = vpop.f32.mrf.mxu1 }
 0x112   :  { %v498_v28 = vmax.f32 %v494_v24, 0.0  ;;  %v493_v29 = vadd.f32 %v650_v17, %v484_v25  ;;  %v487_v30 = vadd.f32 %v804_v26, %v373_v23 }
 0x113   :  { %v475_v33 = vpop.f32.mrf.mxu1 }
 0x114   :  { %v497_v34 = vmax.f32 %v493_v29, 0.0  ;;  %v496_v35 = vadd.f32 %v650_v17, %v487_v30  ;;  %v486_v36 = vadd.f32 %v475_v33, %v372_v27  ;;  %v504_v37 = vmul.f32 %v502_v31, %v498_v28 }
 0x116   :  { %v503_v38 = vmul.f32 %v501_v32, %v497_v34  ;;  %v500_v39 = vmax.f32 %v496_v35, 0.0  ;;  %v495_v40 = vadd.f32 %v650_v17, %v486_v36 }
 0x118   :  { %v507_v41 = vmax.f32 %v503_v38, %v504_v37  ;;  %v499_v42 = vmax.f32 %v495_v40, 0.0  ;;  %v506_v44 = vmul.f32 %v502_v31, %v500_v39 }
 0x11a   :  { %v508_v43 = vrot.slane %v507_v41, 4  ;;  %v505_v45 = vmul.f32 %v501_v32, %v499_v42 }
 0x11c   :  { %v509_v46 = vmax.f32 %v507_v41, %v508_v43  ;;  %v514_v47 = vmax.f32 %v505_v45, %v506_v44 }
 0x11e   :  { %v510_v48 = vrot.slane %v509_v46, 2  ;;  %v515_v49 = vrot.slane %v514_v47, 4 }
 0x120   :  { %v511_v50 = vmax.f32 %v509_v46, %v510_v48  ;;  %v516_v51 = vmax.f32 %v514_v47, %v515_v49 }
 0x122   :  { %v517_v52 = vrot.slane %v516_v51, 2  ;;  %v512_v54 = vrot.slane %v511_v50, 1 }
 0x124   :  { %v518_v53 = vmax.f32 %v516_v51, %v517_v52  ;;  %v513_v56 = vmax.f32 %v511_v50, %v512_v54 }
 0x126   :  { %v519_v55 = vrot.slane %v518_v53, 1 }
 0x128   :  { %v520_v57 = vmax.f32 %v518_v53, %v519_v55 }
 0x12a   :  { %v545_v58 = vsel %vm544_vm2, %v520_v57, %v513_v56 }
 0x12b   :  { %838 = vmatmul.mubr.f32.vlgmr.msra.gmra.mxu0 %v545_v58 }
 0x1eb   :  { %v613_v60 = vpop.f32.mrf.mxu0 }
 0x1ec   :  { %v614_v61 = vadd.f32 %v651_v59, %v613_v60 }
 0x1ed   :  { %v839_v62 = vpop.f32.mrf.mxu0 }
 0x1ee   :  { %617 = vst [vmem:[#allocation7] sm:$0x3] %v614_v61 }
 0x1ef   :  { %898 = shalt.err (!%p895_p0)
}
 0x1f0   :  { %627 = dma.vmem_to_hbm [thread:$0]  %s625_s1, 32, %s962_s2, [#allocation4]  }
 0x1f1   :  { %911 = dma.done.wait [#allocation4], 32  }
 0x1f2   :  { %912 = vsyncadd [#allocation4], 4294967264 }
 0x1f3   :  { %631 = vsyncpa [#allocation3], 1 }
 0x1f4   :  { %632 = vsyncpa [#allocation6], 1 }
 0x1f5   :  { %633 = vsyncpa [#allocation4], 1 }

</bundles_post_ra>
